<compile_context>
chip_gen: v7x
topology: tpu7x:2x2x1
jax: 0.10.0
libtpu: 0.0.40
codegen_flags: <defaults>
</compile_context>

<pallas_src>
import functools
import math

import jax
import jax.numpy as jnp
from jax import lax
from jax.experimental import pallas as pl
from jax.experimental.pallas import tpu as pltpu


def _swa_kernel(x_ref, w_ref, b_ref, mask_ref, o_ref, *, head_dim, inv_scale):
    """One (batch, head) pair per grid step."""
    D = head_dim
    x = x_ref[0]                                                   # (S, E)

    # Fused per-head QKV projection: single MXU matmul, weights already (in, out).
    qkv = jnp.dot(x, w_ref[0], preferred_element_type=jnp.float32) + b_ref[0]  # (S, 3D)
    q = qkv[:, :D] * inv_scale        # fold 1/sqrt(head_dim) into q
    k = qkv[:, D:2 * D]
    v = qkv[:, 2 * D:]

    # q @ k^T without an explicit transpose: contract last dims of both operands.
    logits = lax.dot_general(q, k, (((1,), (1,)), ((), ())),
                             preferred_element_type=jnp.float32)   # (S, S)

    # Additive window mask (precomputed once in the wrapper; -1e30 inside window).
    logits = logits + mask_ref[...]

    # Numerically-stable softmax; normalize with EUP reciprocal + multiply.
    m = jnp.max(logits, axis=-1, keepdims=True)
    e = jnp.exp(logits - m)
    denom = jnp.sum(e, axis=-1, keepdims=True)
    probs = e * pl.reciprocal(denom, approx=True)

    out = jnp.dot(probs, v, preferred_element_type=jnp.float32)    # (S, D)
    o_ref[0, 0] = out.astype(o_ref.dtype)


def sliding_window_attention(x, wq, bq, wk, bk, wv, bv, *, num_heads, window_size):
    B, S, E = x.shape
    H = num_heads
    D = E // H

    # Pre-transpose nn.Linear weights (out,in) -> (in,out), split per head, and
    # fuse q/k/v along the output axis: w_all[h] is (E, 3D) = [Wq_h | Wk_h | Wv_h].
    def per_head(w):                         # (E, E) -> (H, E, D)
        return w.T.reshape(E, H, D).transpose(1, 0, 2)

    w_all = jnp.concatenate([per_head(wq), per_head(wk), per_head(wv)],
                            axis=-1)                                        # (H, E, 3D)
    b_all = jnp.concatenate([bq.reshape(H, 1, D), bk.reshape(H, 1, D),
                             bv.reshape(H, 1, D)], axis=-1)                 # (H, 1, 3D)

    # Additive sliding-window mask, PyTorch semantics: masked INSIDE the window.
    idx = jnp.arange(S)
    inside = jnp.abs(idx[:, None] - idx[None, :]) <= window_size
    mask_add = jnp.where(inside, jnp.float32(-1e30), jnp.float32(0.0))      # (S, S)

    kernel = functools.partial(_swa_kernel, head_dim=D,
                               inv_scale=1.0 / math.sqrt(D))

    out = pl.pallas_call(
        kernel,
        out_shape=jax.ShapeDtypeStruct((B, H, S, D), jnp.float32),
        grid_spec=pltpu.PrefetchScalarGridSpec(
            num_scalar_prefetch=0,
            grid=(B, H),                                   # B*H independent work units
            in_specs=[
                # x block index is constant across h -> no re-copy per head.
                pl.BlockSpec((1, S, E), lambda b, h: (b, 0, 0)),
                pl.BlockSpec((1, E, 3 * D), lambda b, h: (h, 0, 0)),   # fused W_qkv[h]
                pl.BlockSpec((1, 1, 3 * D), lambda b, h: (h, 0, 0)),   # fused b_qkv[h]
                pl.BlockSpec((S, S), lambda b, h: (0, 0)),             # shared window mask
            ],
            out_specs=pl.BlockSpec((1, 1, S, D), lambda b, h: (b, h, 0, 0)),
        ),
        compiler_params=pltpu.CompilerParams(
            dimension_semantics=("parallel", "parallel")),  # megacore / 2-TC sharding
    )(x, w_all, b_all, mask_add)

    # (B, H, S, D) -> (B, S, E): plain XLA layout plumbing outside the kernel.
    return out.transpose(0, 2, 1, 3).reshape(B, S, E)


def _reference(x, wq, bq, wk, bk, wv, bv, num_heads, window_size):
    """Pure-JAX port of the PyTorch forward (for verification)."""
    B, S, E = x.shape
    D = E // num_heads
    q = (x @ wq.T + bq).reshape(B, S, num_heads, D).transpose(0, 2, 1, 3)
    k = (x @ wk.T + bk).reshape(B, S, num_heads, D).transpose(0, 2, 1, 3)
    v = (x @ wv.T + bv).reshape(B, S, num_heads, D).transpose(0, 2, 1, 3)
    logits = jnp.einsum('bhqd,bhkd->bhqk', q, k) / jnp.sqrt(jnp.float32(D))
    idx = jnp.arange(S)
    inside = jnp.abs(idx[:, None] - idx[None, :]) <= window_size
    logits = jnp.where(inside[None, None], -jnp.inf, logits)
    probs = jax.nn.softmax(logits, axis=-1)
    out = jnp.einsum('bhqk,bhkd->bhqd', probs, v)
    return out.transpose(0, 2, 1, 3).reshape(B, S, E)


if __name__ == "__main__":
    # Config: n_embd=32, n_head=4 -> head_dim=8; batch=2, seq=8, window_size=3.
    B, S, E = 2, 8, 32
    num_heads, window_size = 4, 3

    key = jax.random.PRNGKey(0)
    kx, kq, kk, kv, kbq, kbk, kbv = jax.random.split(key, 7)
    x = jax.random.normal(kx, (B, S, E), dtype=jnp.float32)
    wq = 0.02 * jax.random.normal(kq, (E, E), dtype=jnp.float32)
    wk = 0.02 * jax.random.normal(kk, (E, E), dtype=jnp.float32)
    wv = 0.02 * jax.random.normal(kv, (E, E), dtype=jnp.float32)
    bq = 0.01 * jax.random.normal(kbq, (E,), dtype=jnp.float32)
    bk = 0.01 * jax.random.normal(kbk, (E,), dtype=jnp.float32)
    bv = 0.01 * jax.random.normal(kbv, (E,), dtype=jnp.float32)

    out = sliding_window_attention(x, wq, bq, wk, bk, wv, bv,
                                   num_heads=num_heads, window_size=window_size)
    out = jax.block_until_ready(out)

    ref = _reference(x, wq, bq, wk, bk, wv, bv, num_heads, window_size)
    assert out.shape == (B, S, E)
    # Tolerance accounts for the approximate EUP reciprocal in the softmax.
    assert jnp.allclose(out, ref, atol=1e-3, rtol=1e-3), "mismatch vs reference"

    print("KERNEL_OK")
</pallas_src>

<mosaic_0001>
module attributes {stable_mosaic.version = 11 : i64} {
  func.func @_swa_kernel(%arg0: i32, %arg1: i32, %arg2: memref<1x8x32xf32, #tpu.memory_space<vmem>>, %arg3: memref<1x32x24xf32, #tpu.memory_space<vmem>>, %arg4: memref<1x1x24xf32, #tpu.memory_space<vmem>>, %arg5: memref<8x8xf32, #tpu.memory_space<vmem>>, %arg6: memref<1x1x8x8xf32, #tpu.memory_space<vmem>>) attributes {dimension_semantics = [#tpu.dimension_semantics<parallel>, #tpu.dimension_semantics<parallel>], iteration_bounds = array<i64: 2, 4>, scalar_prefetch = 0 : i64, scratch_operands = 0 : i64, tpu.core_type = #tpu.core_type<tc>, window_params = [{transform_indices = @transform_0, window_bounds = array<i64: 1, 8, 32>}, {transform_indices = @transform_1, window_bounds = array<i64: 1, 32, 24>}, {transform_indices = @transform_2, window_bounds = array<i64: 1, 1, 24>}, {pipeline_mode = #tpu.pipeline_mode<synchronous>, transform_indices = @transform_3, window_bounds = array<i64: 8, 8>}, {transform_indices = @transform_4, window_bounds = array<i64: 1, 1, 8, 8>}]} {
    %c0 = arith.constant 0 : index
    %c0_0 = arith.constant 0 : index
    %c0_1 = arith.constant 0 : index
    %0 = vector.load %arg2[%c0, %c0_0, %c0_1] : memref<1x8x32xf32, #tpu.memory_space<vmem>>, vector<1x8x32xf32>
    %1 = vector.shape_cast %0 : vector<1x8x32xf32> to vector<8x32xf32>
    %c0_2 = arith.constant 0 : index
    %c0_3 = arith.constant 0 : index
    %c0_4 = arith.constant 0 : index
    %2 = vector.load %arg3[%c0_2, %c0_3, %c0_4] : memref<1x32x24xf32, #tpu.memory_space<vmem>>, vector<1x32x24xf32>
    %3 = vector.shape_cast %2 : vector<1x32x24xf32> to vector<32x24xf32>
    %cst = arith.constant dense<0.000000e+00> : vector<8x24xf32>
    %4 = tpu.matmul %1, %3, %cst {dimension_numbers = #tpu.dot_dimension_numbers<[1], [0], [0], [1], [0, 0, 1, 1], [], []>} : vector<8x32xf32>, vector<32x24xf32>, vector<8x24xf32> -> vector<8x24xf32>
    %c0_5 = arith.constant 0 : index
    %c0_6 = arith.constant 0 : index
    %c0_7 = arith.constant 0 : index
    %5 = vector.load %arg4[%c0_5, %c0_6, %c0_7] : memref<1x1x24xf32, #tpu.memory_space<vmem>>, vector<1x1x24xf32>
    %6 = vector.shape_cast %5 : vector<1x1x24xf32> to vector<1x24xf32>
    %7 = vector.broadcast %6 : vector<1x24xf32> to vector<8x24xf32>
    %8 = arith.addf %4, %7 : vector<8x24xf32>
    %9 = vector.extract_strided_slice %8 {offsets = [0, 0], sizes = [8, 8], strides = [1, 1]} : vector<8x24xf32> to vector<8x8xf32>
    %cst_8 = arith.constant 0.353553385 : f32
    %10 = vector.broadcast %cst_8 : f32 to vector<8x8xf32>
    %11 = arith.mulf %9, %10 : vector<8x8xf32>
    %12 = vector.extract_strided_slice %8 {offsets = [0, 8], sizes = [8, 8], strides = [1, 1]} : vector<8x24xf32> to vector<8x8xf32>
    %13 = vector.extract_strided_slice %8 {offsets = [0, 16], sizes = [8, 8], strides = [1, 1]} : vector<8x24xf32> to vector<8x8xf32>
    %cst_9 = arith.constant dense<0.000000e+00> : vector<8x8xf32>
    %14 = tpu.matmul %11, %12, %cst_9 {dimension_numbers = #tpu.dot_dimension_numbers<[1], [1], [0], [0], [0, 0, 1, 0], [], []>} : vector<8x8xf32>, vector<8x8xf32>, vector<8x8xf32> -> vector<8x8xf32>
    %c0_10 = arith.constant 0 : index
    %c0_11 = arith.constant 0 : index
    %15 = vector.load %arg5[%c0_10, %c0_11] : memref<8x8xf32, #tpu.memory_space<vmem>>, vector<8x8xf32>
    %16 = arith.addf %14, %15 : vector<8x8xf32>
    %cst_12 = arith.constant dense<0xFF800000> : vector<8xf32>
    %17 = vector.multi_reduction <maximumf>, %16, %cst_12 [1] : vector<8x8xf32> to vector<8xf32>
    %18 = vector.shape_cast %17 : vector<8xf32> to vector<8x1xf32>
    %19 = vector.broadcast %18 : vector<8x1xf32> to vector<8x8xf32>
    %20 = arith.subf %16, %19 : vector<8x8xf32>
    %21 = math.exp %20 : vector<8x8xf32>
    %cst_13 = arith.constant dense<0.000000e+00> : vector<8xf32>
    %22 = vector.multi_reduction <add>, %21, %cst_13 [1] : vector<8x8xf32> to vector<8xf32>
    %23 = vector.shape_cast %22 : vector<8xf32> to vector<8x1xf32>
    %24 = tpu.reciprocal %23 {approx = true} : vector<8x1xf32> -> vector<8x1xf32>
    %25 = vector.broadcast %24 : vector<8x1xf32> to vector<8x8xf32>
    %26 = arith.mulf %21, %25 : vector<8x8xf32>
    %cst_14 = arith.constant dense<0.000000e+00> : vector<8x8xf32>
    %27 = tpu.matmul %26, %13, %cst_14 {dimension_numbers = #tpu.dot_dimension_numbers<[1], [0], [0], [1], [0, 0, 1, 1], [], []>} : vector<8x8xf32>, vector<8x8xf32>, vector<8x8xf32> -> vector<8x8xf32>
    %c0_15 = arith.constant 0 : index
    %c0_16 = arith.constant 0 : index
    %c0_17 = arith.constant 0 : index
    %c0_18 = arith.constant 0 : index
    %28 = vector.load %arg6[%c0_15, %c0_16, %c0_17, %c0_18] : memref<1x1x8x8xf32, #tpu.memory_space<vmem>>, vector<1x1x8x8xf32>
    %29 = vector.shape_cast %28 : vector<1x1x8x8xf32> to vector<8x8xf32>
    %30 = vector.shape_cast %27 : vector<8x8xf32> to vector<1x1x8x8xf32>
    tpu.vector_store %arg6[%c0_15, %c0_16, %c0_17, %c0_18], %30 {strides = array<i32>} : memref<1x1x8x8xf32, #tpu.memory_space<vmem>>, vector<1x1x8x8xf32>,
    return
  }
  func.func @transform_0(%arg0: i32, %arg1: i32) -> (i32, i32, i32) {
    %c0_i32 = arith.constant 0 : i32
    %c0_i32_0 = arith.constant 0 : i32
    %c0_i32_1 = arith.constant 0 : i32
    return %arg0, %c0_i32, %c0_i32_0 : i32, i32, i32
  }
  func.func @transform_1(%arg0: i32, %arg1: i32) -> (i32, i32, i32) {
    %c0_i32 = arith.constant 0 : i32
    %c0_i32_0 = arith.constant 0 : i32
    %c0_i32_1 = arith.constant 0 : i32
    return %arg1, %c0_i32, %c0_i32_0 : i32, i32, i32
  }
  func.func @transform_2(%arg0: i32, %arg1: i32) -> (i32, i32, i32) {
    %c0_i32 = arith.constant 0 : i32
    %c0_i32_0 = arith.constant 0 : i32
    %c0_i32_1 = arith.constant 0 : i32
    return %arg1, %c0_i32, %c0_i32_0 : i32, i32, i32
  }
  func.func @transform_3(%arg0: i32, %arg1: i32) -> (i32, i32) {
    %c0_i32 = arith.constant 0 : i32
    %c0_i32_0 = arith.constant 0 : i32
    %c0_i32_1 = arith.constant 0 : i32
    return %c0_i32, %c0_i32_0 : i32, i32
  }
  func.func @transform_4(%arg0: i32, %arg1: i32) -> (i32, i32, i32, i32) {
    %c0_i32 = arith.constant 0 : i32
    %c0_i32_0 = arith.constant 0 : i32
    %c0_i32_1 = arith.constant 0 : i32
    return %arg0, %arg1, %c0_i32, %c0_i32_0 : i32, i32, i32, i32
  }
}

</mosaic_0001>

<bundles_post_ra>
// kernel: tpu_custom_call.1
= control target key start
LH: loop header
LB: loop body
LE: loop exit
PB: predicated region body
PF: predicated region fallthrough
CT: control target
= control target key end

     0   :  { %9 = vsyncpa [#allocation3], 0  ;;  %s1023_s0 = inlined_call_operand.vmem [shape: f32[2,8,32], index: 0, kind: input, shape index: {}]   ;;  %s1024_s1 = inlined_call_operand.vmem [shape: f32[4,32,24], index: 1, kind: input, shape index: {}]   ;;  %s1025_s2 = inlined_call_operand.vmem [shape: f32[4,1,24], index: 2, kind: input, shape index: {}]   ;;  %s1026_s3 = inlined_call_operand.vmem [shape: f32[8,8], index: 3, kind: input, shape index: {}]   ;;  %s1027_s4 = inlined_call_operand.hbm [shape: f32[2,4,8,8], index: 4, kind: output, shape index: {}]  }
   0x1   :  { %11 = vsyncpa [#allocation3 + $0x1], 0  ;;  %s868_s15 = smov 0   ;;  %s870_s16 = smov 0  }
   0x2   :  { %s872_s17 = smov 0   ;;  %s874_s18 = smov 0  }
   0x3   :  { %s876_s19 = smov 0   ;;  %s878_s20 = smov 0  }
   0x4   :  { %s880_s21 = smov 0   ;;  %s882_s22 = smov 0  }
   0x5 LB: > { %s605_s23 = sadd.s32 4294967295, %s835_s22   ;;  %s606_s24 = sadd.s32 4294967294, %s835_s22   ;;  %s835_s22 = sphi %s882_s22, %s17_s22   ;;  %s831_s21 = sphi %s880_s21, %s1036_s21   ;;  %s827_s20 = sphi %s878_s20, %s1035_s20   ;;  %s823_s19 = sphi %s876_s19, %s1034_s19   ;;  %s819_s18 = sphi %s874_s18, %s1033_s18   ;;  %s815_s17 = sphi %s872_s17, %s1032_s17   ;;  %s811_s16 = sphi %s870_s16, %s1031_s16   ;;  %s807_s15 = sphi %s868_s15, %s1030_s15  }
   0x6   : > { %s26_s25 = sadd.s32 1, %s827_s20  ;;  %s29_s26 = sadd.s32 1, %s831_s21 }
   0x7   : > { %p27_p0 = scmp.ge.s32.totalorder %s26_s25, 4  ;;  %p147_p1 = scmp.ne.s32.totalorder %s815_s17, %s811_s16 }
   0x8   : > { %p148_p2 = scmp.eq.s32.totalorder %s605_s23, 7  ;;  %p153_p5 = scmp.ne.s32.totalorder %s811_s16, %s807_s15 }
   0x9   : > { %s1038_s25 = smov (%p27_p0, %s26_s25), 0  ;;  %s1040_s26 = smov (!%p27_p0, %s29_s26), %s831_s21 }
   0xa   : > { %s133_s27 = ssub.s32 %s827_s20, %s1038_s25  ;;  %p919_p3 = por %p148_p2, %p147_p1 }
   0xb   : > { %p31_p4 = scmp.ge.s32.totalorder %s1040_s26, 2  ;;  %p154_p6 = scmp.eq.s32.totalorder %s606_s24, 7 }
   0xc   : > { %p609_p7 = scmp.ge.s32.totalorder %s835_s22, 1  ;;  %p196_p9 = scmp.lt.s32.totalorder %s835_s22, 9 }
   0xd   : > { %s1042_s26 = smov (%p31_p4, %s1040_s26), 0  ;;  %p928_p8 = por %p154_p6, %p153_p5 }
   0xe   : > { %s132_s30 = ssub.s32 %s831_s21, %s1042_s26  ;;  %s137_s5 = sadd.s32 1, %s815_s17 }
   0xf   : > { %s134_s6 = sor.u32 %s133_s27, %s132_s30  ;;  %p197_p10 = pnand %p609_p7, %p196_p9 }
  0x10   : > { %p135_p11 = scmp.eq.s32.totalorder %s134_s6, 0  ;;  %p233_p12 = scmp.lt.s32.totalorder (!%p197_p10), %s819_s18, 3  ;;  %v837_v0 = vmov (!%p197_p10), 0.0|0.0   ;;  %vm838_vm0 = vmmov (!%p197_p10), 0   ;;  %v839_v1 = vmov (!%p197_p10), 0.0   ;;  %vm253_vm1 = vcmask (!%p197_p10), 261120  }
  0x11   : > { %200 = sbr.rel (%p197_p10) target bundleno = 1124 (0x464), region = 36  ;;  %p229_p13 = scmp.lt.s32.totalorder (!%p197_p10), %s823_s19, 1  ;;  %655 = vmatprep.subr.bf16.mxu0 (!%p197_p10), %v837_v0  ;;  %642 = vmatprep.mubr.msk.f32.mxu0 (!%p197_p10), %vm838_vm0, %v839_v1  ;;  %vm332_vm2 = vcmask (!%p197_p10), 64512   ;;  %v328_v15 = vld [vmem:[%s1026_s3] sm:$0xff] (!%p197_p10) }
  0x12   : > { %s937_s7 = scalar_select %p135_p11, %s815_s17, %s137_s5  }
  0x13   : > { %645 = vmatprep.subr.mxu1 (!%p197_p10), %v839_v1  ;;  %647 = vmatprep.mubr.msk.f32.mxu1 (!%p197_p10), %vm838_vm0, %v839_v1  ;;  %s226_s12 = sand.u32 (!%p197_p10), 1, %s811_s16  }
  0x18   : > { %s234_s8 = scalar_select %p233_p12, %s819_s18, 3 }
  0x19   : > { %s230_s9 = scalar_select %p229_p13, %s823_s19, 1 }
  0x1a   : > { %s624_s10 = sshll.u32 %s234_s8, 5  ;;  %s240_s6 = scalar_lea.vmem %s1025_s2, %s234_s8 }
  0x1b   : > { %s237_s13 = scalar_lea.vmem %s1024_s1, %s624_s10  ;;  %s611_s14 = sshll.u32 %s230_s9, 3  ;;  %v614_v9 = vld [vmem:[%s240_s6] ss:$0 sm:$0xff] }
  0x1c   : > { %v242_v2 = vld [vmem:[%s237_s13] sm:$0xff]  ;;  %v243_v3 = vld [vmem:[%s237_s13 + $0x8] sm:$0xff]  ;;  %v244_v4 = vld [vmem:[%s237_s13 + $0x10] sm:$0xff]  ;;  %s232_s27 = scalar_lea.vmem %s1023_s0, %s611_s14  ;;  %s840_s9 = smov 120  }
  0x1d   : > { %v656_v5 = vpack.c.bf16 %v243_v3, %v242_v2  ;;  %v245_v6 = vld [vmem:[%s237_s13 + $0x18] sm:$0xff]  ;;  %v241_v8 = vld [vmem:[%s232_s27] sm:$0xff]  ;;  %s841_s8 = smov 112   ;;  %s610_s13 = sshll.u32 %s226_s12, 3 }
  0x1e   : > { %v659_v7 = vpack.c.bf16 %v245_v6, %v244_v4  ;;  %s620_s14 = sshll.u32 %s823_s19, 2  ;;  %s228_s27 = scalar_lea.vmem [#allocation2], %s610_s13 }
  0x1f   : > { %657 = vmatpush3.bf16.msra.mxu0 %v656_v5  ;;  %s508_s23 = sadd.s32 %s819_s18, %s620_s14  ;;  %s512_s30 = sshll.u32 %s228_s27, 4  ;;  %s971_s30 = int_to_ptr.vmem [resolvable:$true] %s512_s30 }
  0x20   : > { %658 = vmatprep.subr.bf16.mxu0 %v837_v0  ;;  %s621_s24 = sshll.u32 %s508_s23, 7  ;;  %s497_s10 = scalar_lea.sflag [#allocation3], %s226_s12 }
  0x21   : > { %s741_s19 = scalar_lea.vmem %s971_s30, 128  ;;  %s842_s18 = smov [#allocation2]  }
  0x22   : > { %p742_p0 = scmp.ne.s32.totalorder %s971_s30, %s741_s19  ;;  %s745_s11 = sshll.u32 %s842_s18, 4  ;;  %s746_s11 = int_to_ptr.vmem [resolvable:$false] %s745_s11 }
  0x23   : > { %660 = vmatpush3.bf16.msra.mxu0 %v659_v7  ;;  %p748_p4 = scmp.lt.s32.totalorder %s971_s30, %s746_s11 }
  0x24   : > { %p743_p1 = pnand %p742_p0, %p919_p3 }
  0x26   : > { %643 = vmatmul.mubr.msk.f32.vlgmr.msra.gmra.mrb[0].mxu0 %vm253_vm1, %v241_v8  ;;  %p744_p2 = pneg %p743_p1 }
  0xf9   : > { %v323_v10 = vpop.f32.mrb[0].mxu0 }
  0xfa   : > { %v324_v11 = vadd.f32 %v614_v9, %v323_v10  ;;  %v644_v12 = vpop.f32.mrb[1].mxu0 }
  0xfc   : > { %330 = vrot.lane.b32.xlu0 %v324_v11, %s840_s9  ;;  %v327_v14 = vmul.f32 0.35355338, %v324_v11  ;;  %s969_s9 = scalar_lea.hbm %s1027_s4, %s621_s24 }
 0x16e   : > { %v331_v13 = vpop.permute.xlu0 %330 }
 0x16f   : > { %646 = vmatpush3.xpose.msk.msra.mxu1 %vm332_vm2, %v331_v13 }
 0x170   : > { %650 = vmatprep.subr.mxu1 %v839_v1 }
 0x172   : > { %648 = vmatmul.mubr.msk.f32.vlgmr.msra.gmra.mrb[0].mxu1 %vm332_vm2, %v327_v14 }
 0x173   : > { %652 = vmatprep.mubr.msk.f32.mxu1 %vm838_vm0, %v839_v1 }
 0x245   : > { %v404_v16 = vpop.f32.mrb[0].mxu1 }
 0x246   : > { %v405_v17 = vadd.f32 %v404_v16, %v328_v15  ;;  %v649_v18 = vpop.f32.mrb[1].mxu1 }
 0x248   : > { %v408_v19 = vsel %vm332_vm2, %v405_v17, -inf }
 0x249   : > { %409 = vmax.xlane.f32.xlu0 %v408_v19 }
 0x2d6   : > { %v410_v20 = vpop.xlane.xlu0 %409 }
 0x2d7   : > { %v411_v21 = vsub.f32 %v405_v17, %v410_v20 }
 0x2d9   : > { %v412_v22 = vmul.f32 1.442695, %v411_v21 }
 0x2db   : > { %737 = vpow2.f32 %v412_v22 }
 0x2e5   : > { %v738_v23 = vpop.eup %737 }
 0x2e6   : > { %v414_v24 = vsel %vm332_vm2, %v738_v23, 0.0 }
 0x2e7   : > { %415 = vadd.xlane.f32.xlu1 %v414_v24 }
 0x2f8   : > { %419 = vrot.lane.b32.xlu1 %v324_v11, %s841_s8  ;;  %s747_s8 = scalar_lea.vmem %s746_s11, 256 }
 0x2f9   : > { %p749_p5 = scmp.lt.s32.totalorder %s747_s8, %s741_s19 }
 0x2fb   : > { %p750_p6 = por %p749_p5, %p748_p4 }
 0x2fd   : > { %p751_p7 = pnand %p750_p6, %p744_p2 }
 0x374   : > { %v416_v25 = vpop.xlane.xlu1 %415 }
 0x375   : > { %739 = vrcp.f32 %v416_v25 }
 0x378   : > { %v420_v26 = vpop.permute.xlu1 %419 }
 0x379   : > { %651 = vmatpush3.msra.mxu1 %v420_v26 }
 0x37f   : > { %v740_v27 = vpop.eup %739 }
 0x380   : > { %v418_v28 = vmul.f32 %v740_v27, %v738_v23 }
 0x382   : > { %653 = vmatmul.mubr.msk.f32.vlgmr.msra.gmra.mrb[2].mxu1 %vm332_vm2, %v418_v28 }
 0x455   : > { %v491_v29 = vpop.f32.mrb[2].mxu1 }
 0x456   : > { %495 = vst.msk [vmem:[%s228_s27] sm:$0xff] %vm332_vm2, %v491_v29  ;;  %v654_v30 = vpop.f32.mrb[3].mxu1 }
 0x457   : > { %754 = shalt.err (!%p751_p7)
}
 0x458   : > { %s755_s12 = scalar_lea.hbm %s969_s9, 128  ;;  %s759_s23 = scalar_lea.hbm %s1027_s4, 1024 }
 0x459   : > { %p756_p9 = scmp.ne.s32.totalorder %s969_s9, %s755_s12  ;;  %p760_p12 = scmp.lt.u32.totalorder %s969_s9, %s1027_s4 }
 0x45a   : > { %p761_p13 = scmp.lt.u32.totalorder %s759_s23, %s755_s12  ;;  %p763_p1 = scmp.lt.u32.totalorder %s755_s12, %s969_s9 }
 0x45b   : > { %p757_p10 = pnand %p756_p9, %p919_p3 }
 0x45c   : > { %p762_p0 = por %p761_p13, %p760_p12 }
 0x45d   : > { %p758_p11 = pneg %p757_p10 }
 0x45e   : > { %p764_p2 = por %p763_p1, %p762_p0 }
 0x460   : > { %p765_p4 = pnand %p764_p2, %p758_p11 }
 0x462   : > { %768 = shalt.err (!%p765_p4)
}
 0x463   : > { %661 = dma.vmem_to_hbm [thread:$0]  (%p919_p3), %s971_s30, 128, %s969_s9, %s497_s10  }
 0x464 PF: > { %p667_p5 = scmp.ge.s32.totalorder %s835_s22, 2  ;;  %s524_s5 = sand.u32 1, %s807_s15  }
 0x465   : > { %s525_s6 = scalar_lea.sflag [#allocation3], %s524_s5 }
 0x466   : > { %p664_p6 = pnand %p667_p5, %p928_p8 }
 0x468   : > { %802 = dma.done.wait (!%p664_p6), %s525_s6, 128  }
 0x469   : > { %804 = vsyncadd (!%p664_p6), %s525_s6, 4294967168  ;;  %s17_s22 = sadd.s32 1, %s835_s22   ;;  %s1030_s15 = smov %s811_s16 }
 0x46a   : > { %p14_p7 = scmp.ge.s32.totalorder %s17_s22, 10   ;;  %s1031_s16 = smov %s815_s17 }
 0x46b   : > { %s1032_s17 = smov %s937_s7  ;;  %s1033_s18 = smov %s827_s20 }
 0x46c   : > { %s1034_s19 = smov %s831_s21  ;;  %s1035_s20 = smov %s1038_s25 }
 0x46d   : > { %s1036_s21 = smov %s1042_s26  ;;  %16 = sbr.rel (!%p14_p7) target bundleno = 5 (0x5), region = 77 }
 0x474   :  { %530 = vsyncpa [#allocation3], 1 }
 0x475   :  { %532 = vsyncpa [#allocation3 + $0x1], 1 }

</bundles_post_ra>
